<compile_context>
chip_gen: v6e
topology: v6e:2x2x1
jax: 0.10.0
libtpu: 0.0.40
codegen_flags: <defaults>
</compile_context>

<pallas_src>
import functools
import math

import jax
import jax.numpy as jnp
from jax.experimental import pallas as pl
from jax.experimental.pallas import tpu as pltpu


def _embed_kernel(ids_ref, emb_ref, out_ref, *, scale, k):
    """One grid step: embed T = tk*k tokens.

    ids_ref : (tk, k)          int32 token ids, k tokens packed per output row
    emb_ref : (vocab, d_model) full embedding table, resident in VMEM
    out_ref : (tk, k*d_model)  lane-dense output tile
    """
    vocab, d_model = emb_ref.shape
    tk = ids_ref.shape[0]

    ids = ids_ref[...]                                     # (tk, k) int32
    table = emb_ref[...]                                   # (vocab, d_model)
    iota_v = jax.lax.broadcasted_iota(jnp.int32, (tk, vocab), 1)

    # Static unroll over the k packed token groups (k == 1 when d_model >= 128).
    pieces = []
    for j in range(k):
        one_hot = (iota_v == ids[:, j:j + 1]).astype(table.dtype)   # (tk, vocab)
        rows = jnp.dot(one_hot, table, preferred_element_type=jnp.float32)
        pieces.append(rows * scale)                        # (tk, d_model) f32

    tile = pieces[0] if k == 1 else jnp.concatenate(pieces, axis=-1)
    out_ref[...] = tile.astype(out_ref.dtype)              # single full-tile store


def input_embedding(ids, emb_table, *, tokens_per_tile=256):
    """Pallas equivalent of InputEmbedding.forward: embed(ids) * sqrt(d_model)."""
    B, S = ids.shape
    vocab, d_model = emb_table.shape
    scale = math.sqrt(d_model)

    # Lane packing factor: concatenate k tokens per output row so the writeback
    # tile is 128-lane dense even for small d_model.
    if d_model < 128 and 128 % d_model == 0:
        k = 128 // d_model
    else:
        k = 1

    n_tok = B * S
    group = 8 * k                       # 8 sublanes x k lane-packed tokens
    # Tokens per grid step: a multiple of `group`, ~tokens_per_tile, but no
    # larger than needed for tiny inputs.
    T = group * max(1, min(pl.cdiv(tokens_per_tile, group), pl.cdiv(n_tok, group)))
    n_tiles = pl.cdiv(n_tok, T)
    n_pad = n_tiles * T

    ids_flat = ids.reshape(n_tok).astype(jnp.int32)
    if n_pad != n_tok:
        ids_flat = jnp.pad(ids_flat, (0, n_pad - n_tok))   # pad ids = 0 (valid row)
    ids2d = ids_flat.reshape(n_pad // k, k)

    # Resident-table path: table must fit in VMEM with headroom (safe on
    # v5e/v6e 128 MiB and v7x 64 MiB per TC).
    table_bytes = int(vocab) * int(d_model) * jnp.dtype(emb_table.dtype).itemsize
    assert table_bytes <= 24 * 2**20, (
        "embedding table too large for the resident-in-VMEM one-hot-matmul path")
    # TODO(synk): add a streamed manual-DMA row-gather path (memory_space=pl.ANY
    # + multiple in-flight make_async_copy) for vocabularies that don't fit VMEM.

    # Raise the scoped VMEM limit only if our estimate needs it.
    est_vmem = 2 * table_bytes + 4 * T * (k * d_model + vocab) * 4 + (1 << 20)
    cp_kwargs = {}
    if est_vmem > 32 * 2**20:
        cp_kwargs["vmem_limit_bytes"] = int(min(est_vmem, 100 * 2**20))

    kernel = functools.partial(_embed_kernel, scale=scale, k=k)

    out2d = pl.pallas_call(
        kernel,
        out_shape=jax.ShapeDtypeStruct((n_pad // k, k * d_model), emb_table.dtype),
        grid=(n_tiles,),
        in_specs=[
            # token-id tile for this step
            pl.BlockSpec((T // k, k), lambda i: (i, 0)),
            # full table, constant block index -> fetched once, stays resident
            pl.BlockSpec((vocab, d_model), lambda i: (0, 0)),
        ],
        out_specs=pl.BlockSpec((T // k, k * d_model), lambda i: (i, 0)),
        compiler_params=pltpu.CompilerParams(
            dimension_semantics=("parallel",), **cp_kwargs),
    )(ids2d, emb_table)

    # Undo the lane packing / padding (pure reshapes + slice, same bytes).
    out = out2d.reshape(n_pad, d_model)[:n_tok]
    return out.reshape(B, S, d_model)


if __name__ == "__main__":
    # Small shapes consistent with the module: batch=2, seq=8, d_model=32, vocab=64
    B, S, d_model, vocab_size = 2, 8, 32, 64

    key = jax.random.PRNGKey(0)
    k_emb, k_ids = jax.random.split(key)

    # Deterministic parameter init (nn.Embedding default ~ N(0,1))
    emb_table = jax.random.normal(k_emb, (vocab_size, d_model), dtype=jnp.float32)
    ids = jax.random.randint(k_ids, (B, S), 0, vocab_size, dtype=jnp.int32)

    out = jax.block_until_ready(input_embedding(ids, emb_table))

    # Sanity check against plain-JAX reference
    ref = jnp.take(emb_table, ids, axis=0) * math.sqrt(d_model)
    assert out.shape == (B, S, d_model)
    assert jnp.allclose(out, ref, atol=1e-4, rtol=1e-5), "mismatch vs reference"

    print("KERNEL_OK")
</pallas_src>

<mosaic_0001>
module attributes {stable_mosaic.version = 11 : i64} {
  func.func @_embed_kernel(%arg0: i32, %arg1: memref<8x4xi32, #tpu.memory_space<vmem>>, %arg2: memref<64x32xf32, #tpu.memory_space<vmem>>, %arg3: memref<8x128xf32, #tpu.memory_space<vmem>>) attributes {dimension_semantics = [#tpu.dimension_semantics<parallel>], iteration_bounds = array<i64: 1>, scalar_prefetch = 0 : i64, scratch_operands = 0 : i64, tpu.core_type = #tpu.core_type<tc>, window_params = [{transform_indices = @transform_0, window_bounds = array<i64: 8, 4>}, {pipeline_mode = #tpu.pipeline_mode<synchronous>, transform_indices = @transform_1, window_bounds = array<i64: 64, 32>}, {transform_indices = @transform_2, window_bounds = array<i64: 8, 128>}]} {
    %c0 = arith.constant 0 : index
    %c0_0 = arith.constant 0 : index
    %0 = vector.load %arg1[%c0, %c0_0] : memref<8x4xi32, #tpu.memory_space<vmem>>, vector<8x4xi32>
    %c0_1 = arith.constant 0 : index
    %c0_2 = arith.constant 0 : index
    %1 = vector.load %arg2[%c0_1, %c0_2] : memref<64x32xf32, #tpu.memory_space<vmem>>, vector<64x32xf32>
    %2 = tpu.iota {dimensions = array<i32: 1>} : vector<8x64xi32>
    %3 = vector.extract_strided_slice %0 {offsets = [0, 0], sizes = [8, 1], strides = [1, 1]} : vector<8x4xi32> to vector<8x1xi32>
    %4 = vector.broadcast %3 : vector<8x1xi32> to vector<8x64xi32>
    %5 = arith.cmpi eq, %2, %4 : vector<8x64xi32>
    %6 = arith.extui %5 : vector<8x64xi1> to vector<8x64xi32>
    %7 = arith.sitofp %6 : vector<8x64xi32> to vector<8x64xf32>
    %cst = arith.constant dense<0.000000e+00> : vector<8x32xf32>
    %8 = tpu.matmul %7, %1, %cst {dimension_numbers = #tpu.dot_dimension_numbers<[1], [0], [0], [1], [0, 0, 1, 1], [], []>} : vector<8x64xf32>, vector<64x32xf32>, vector<8x32xf32> -> vector<8x32xf32>
    %cst_3 = arith.constant 5.65685415 : f32
    %9 = vector.broadcast %cst_3 : f32 to vector<8x32xf32>
    %10 = arith.mulf %8, %9 : vector<8x32xf32>
    %11 = vector.extract_strided_slice %0 {offsets = [0, 1], sizes = [8, 1], strides = [1, 1]} : vector<8x4xi32> to vector<8x1xi32>
    %12 = vector.broadcast %11 : vector<8x1xi32> to vector<8x64xi32>
    %13 = arith.cmpi eq, %2, %12 : vector<8x64xi32>
    %14 = arith.extui %13 : vector<8x64xi1> to vector<8x64xi32>
    %15 = arith.sitofp %14 : vector<8x64xi32> to vector<8x64xf32>
    %cst_4 = arith.constant dense<0.000000e+00> : vector<8x32xf32>
    %16 = tpu.matmul %15, %1, %cst_4 {dimension_numbers = #tpu.dot_dimension_numbers<[1], [0], [0], [1], [0, 0, 1, 1], [], []>} : vector<8x64xf32>, vector<64x32xf32>, vector<8x32xf32> -> vector<8x32xf32>
    %cst_5 = arith.constant 5.65685415 : f32
    %17 = vector.broadcast %cst_5 : f32 to vector<8x32xf32>
    %18 = arith.mulf %16, %17 : vector<8x32xf32>
    %19 = vector.extract_strided_slice %0 {offsets = [0, 2], sizes = [8, 1], strides = [1, 1]} : vector<8x4xi32> to vector<8x1xi32>
    %20 = vector.broadcast %19 : vector<8x1xi32> to vector<8x64xi32>
    %21 = arith.cmpi eq, %2, %20 : vector<8x64xi32>
    %22 = arith.extui %21 : vector<8x64xi1> to vector<8x64xi32>
    %23 = arith.sitofp %22 : vector<8x64xi32> to vector<8x64xf32>
    %cst_6 = arith.constant dense<0.000000e+00> : vector<8x32xf32>
    %24 = tpu.matmul %23, %1, %cst_6 {dimension_numbers = #tpu.dot_dimension_numbers<[1], [0], [0], [1], [0, 0, 1, 1], [], []>} : vector<8x64xf32>, vector<64x32xf32>, vector<8x32xf32> -> vector<8x32xf32>
    %cst_7 = arith.constant 5.65685415 : f32
    %25 = vector.broadcast %cst_7 : f32 to vector<8x32xf32>
    %26 = arith.mulf %24, %25 : vector<8x32xf32>
    %27 = vector.extract_strided_slice %0 {offsets = [0, 3], sizes = [8, 1], strides = [1, 1]} : vector<8x4xi32> to vector<8x1xi32>
    %28 = vector.broadcast %27 : vector<8x1xi32> to vector<8x64xi32>
    %29 = arith.cmpi eq, %2, %28 : vector<8x64xi32>
    %30 = arith.extui %29 : vector<8x64xi1> to vector<8x64xi32>
    %31 = arith.sitofp %30 : vector<8x64xi32> to vector<8x64xf32>
    %cst_8 = arith.constant dense<0.000000e+00> : vector<8x32xf32>
    %32 = tpu.matmul %31, %1, %cst_8 {dimension_numbers = #tpu.dot_dimension_numbers<[1], [0], [0], [1], [0, 0, 1, 1], [], []>} : vector<8x64xf32>, vector<64x32xf32>, vector<8x32xf32> -> vector<8x32xf32>
    %cst_9 = arith.constant 5.65685415 : f32
    %33 = vector.broadcast %cst_9 : f32 to vector<8x32xf32>
    %34 = arith.mulf %32, %33 : vector<8x32xf32>
    %35 = tpu.concatenate %10, %18, %26, %34 in 1 : vector<8x32xf32>, vector<8x32xf32>, vector<8x32xf32>, vector<8x32xf32> -> vector<8x128xf32>
    %c0_10 = arith.constant 0 : index
    %c0_11 = arith.constant 0 : index
    %36 = vector.load %arg3[%c0_10, %c0_11] : memref<8x128xf32, #tpu.memory_space<vmem>>, vector<8x128xf32>
    tpu.vector_store %arg3[%c0_10, %c0_11], %35 {strides = array<i32>} : memref<8x128xf32, #tpu.memory_space<vmem>>, vector<8x128xf32>,
    return
  }
  func.func @transform_0(%arg0: i32) -> (i32, i32) {
    %c0_i32 = arith.constant 0 : i32
    %c0_i32_0 = arith.constant 0 : i32
    return %arg0, %c0_i32 : i32, i32
  }
  func.func @transform_1(%arg0: i32) -> (i32, i32) {
    %c0_i32 = arith.constant 0 : i32
    %c0_i32_0 = arith.constant 0 : i32
    %c0_i32_1 = arith.constant 0 : i32
    return %c0_i32, %c0_i32_0 : i32, i32
  }
  func.func @transform_2(%arg0: i32) -> (i32, i32) {
    %c0_i32 = arith.constant 0 : i32
    %c0_i32_0 = arith.constant 0 : i32
    return %arg0, %c0_i32 : i32, i32
  }
}

</mosaic_0001>

<bundles_post_ra>
// kernel: tpu_custom_call.1
= control target key start
LH: loop header
LB: loop body
LE: loop exit
PB: predicated region body
PF: predicated region fallthrough
CT: control target
= control target key end

     0   :  { %v533_v1 = vmov 0   ;;  %v534_v2 = vmov 2   ;;  %v535_v4 = vmov 0.0   ;;  %s679_s0 = inlined_call_operand.vmem [shape: s32[8,4], index: 0, kind: input, shape index: {}]   ;;  %s680_s1 = inlined_call_operand.vmem [shape: f32[64,32], index: 1, kind: input, shape index: {}]   ;;  %s681_s2 = inlined_call_operand.hbm [shape: f32[8,128], index: 2, kind: output, shape index: {}]  }
   0x1   :  { %v12_v0 = vld [vmem:[%s679_s0] sm:$0xff]  ;;  %506 = vset.pattern.permute.xlu0 %v533_v1  ;;  %508 = vset.pattern.permute.xlu1 %v534_v2  ;;  %v564_v3 = vld [vmem:[%s680_s1 + $0x38] sm:$0xff] }
   0x2   :  { %24 = vperm.xlu0 %506, %v12_v0   ;;  %185 = vperm.xlu1 %508, %v12_v0  }
   0x3   :  { %420 = vmatprep.subr.mxu0 %v535_v4  ;;  %439 = vmatprep.subr.mxu1 %v535_v4 }
   0x4   :  { %7 = vsyncpa [#allocation3], 0  ;;  %421 = vmatpush3.msra.mxu0 %v564_v3  ;;  %440 = vmatpush3.msra.mxu1 %v564_v3  ;;  %v574_v5 = vld [vmem:[%s680_s1 + $0x30] sm:$0xff]  ;;  %v536_v6 = vmov 1   ;;  %v537_v7 = vmov 3   ;;  %v580_v8 = vld [vmem:[%s680_s1 + $0x28] sm:$0xff]  ;;  %v21_v14 = vlaneseq }
   0x5   :  { %422 = vmatprep.subr.mxu0 %v535_v4  ;;  %441 = vmatprep.subr.mxu1 %v535_v4  ;;  %v588_v9 = vld [vmem:[%s680_s1 + $0x20] sm:$0xff]  ;;  %v597_v10 = vld [vmem:[%s680_s1 + $0x18] sm:$0xff]  ;;  %v606_v11 = vld [vmem:[%s680_s1 + $0x10] sm:$0xff]  ;;  %vm538_vm0 = vmmov 0   ;;  %vm29_vm1 = vcmask 523264   ;;  %s540_s26 = smov 64  }
   0x6   :  { %507 = vset.pattern.permute.xlu0 %v536_v6  ;;  %509 = vset.pattern.permute.xlu1 %v537_v7  ;;  %v615_v12 = vld [vmem:[%s680_s1 + $0x8] sm:$0xff]  ;;  %v13_v13 = vld [vmem:[%s680_s1] sm:$0xff]  ;;  %v22_v15 = vand.u32 127, %v21_v14  ;;  %s539_s1 = smov 32   ;;  %s541_s27 = smov 96   ;;  %vm356_vm6 = vcmask 261120  }
   0x7   :  { %105 = vperm.xlu0 %507, %v12_v0   ;;  %265 = vperm.xlu1 %509, %v12_v0   ;;  %s542_s28 = smov [#allocation2]   ;;  %vm359_vm7 = vcmask 785408  }
   0x8   :  { %423 = vmatpush3.msra.mxu0 %v574_v5  ;;  %442 = vmatpush3.msra.mxu1 %v574_v5  ;;  %s368_s29 = sshll.u32 %s542_s28, 4  ;;  %s369_s29 = int_to_ptr.vmem [resolvable:$true] %s368_s29 }
   0x9   :  { %424 = vmatprep.subr.mxu0 %v535_v4  ;;  %443 = vmatprep.subr.mxu1 %v535_v4  ;;  %s511_s30 = scalar_lea.vmem %s369_s29, 128  ;;  %p516_p1 = scmp.lt.s32.totalorder %s369_s29, %s369_s29 }
   0xa   :  { %425 = vmatpush3.msra.mxu0 %v580_v8  ;;  %444 = vmatpush3.msra.mxu1 %v580_v8  ;;  %p512_p0 = scmp.ne.s32.totalorder %s369_s29, %s511_s30  ;;  %p517_p2 = scmp.lt.s32.totalorder %s511_s30, %s511_s30 }
   0xb   :  { %426 = vmatprep.subr.mxu0 %v535_v4  ;;  %445 = vmatprep.subr.mxu1 %v535_v4 }
   0xc   :  { %427 = vmatpush3.msra.mxu0 %v588_v9  ;;  %446 = vmatpush3.msra.mxu1 %v588_v9  ;;  %p518_p3 = por %p517_p2, %p516_p1 }
   0xd   :  { %428 = vmatprep.subr.mxu0 %v535_v4  ;;  %447 = vmatprep.subr.mxu1 %v535_v4 }
   0xe   :  { %429 = vmatpush3.msra.mxu0 %v597_v10  ;;  %448 = vmatpush3.msra.mxu1 %v597_v10  ;;  %p519_p4 = pnand %p518_p3, %p512_p0 }
   0xf   :  { %430 = vmatprep.subr.mxu0 %v535_v4  ;;  %449 = vmatprep.subr.mxu1 %v535_v4 }
  0x10   :  { %431 = vmatpush3.msra.mxu0 %v606_v11  ;;  %436 = vmatprep.mubr.msk.f32.mxu0 %vm538_vm0, %v535_v4 }
  0x11   :  { %432 = vmatprep.subr.mxu0 %v535_v4  ;;  %450 = vmatpush3.msra.mxu1 %v606_v11 }
  0x12   :  { %433 = vmatpush3.msra.mxu0 %v615_v12  ;;  %451 = vmatprep.subr.mxu1 %v535_v4 }
  0x13   :  { %434 = vmatprep.subr.mxu0 %v535_v4  ;;  %452 = vmatpush3.msra.mxu1 %v615_v12 }
  0x14   :  { %435 = vmatpush3.msra.mxu0 %v13_v13  ;;  %453 = vmatprep.subr.mxu1 %v535_v4 }
  0x15   :  { %458 = vmatprep.subr.mxu0 %v535_v4  ;;  %454 = vmatpush3.msra.mxu1 %v13_v13 }
  0x16   :  { %455 = vmatprep.mubr.msk.f32.mxu1 %vm538_vm0, %v535_v4  ;;  %477 = vmatprep.subr.mxu1 %v535_v4 }
  0x17   :  { %510 = vset.pattern.permute.xlu0 %v537_v7 }
  0x7d   :  { %v25_v16 = vpop.permute.xlu0 %24  ;;  %v186_v20 = vpop.permute.xlu1 %185 }
  0x7e   :  { %vm26_vm2 = vcmp.eq.s32.totalorder %v22_v15, %v25_v16  ;;  %vm187_vm4 = vcmp.eq.s32.totalorder %v22_v15, %v186_v20 }
  0x7f   :  { %v376_v17 = vsel %vm26_vm2, 1.0, %v535_v4  ;;  %v380_v22 = vsel %vm187_vm4, 1.0, %v535_v4 }
  0x80   :  { %437 = vmatmul.mubr.msk.f32.vlgmr.msra.gmra.mxu0 %vm29_vm1, %v376_v17 }
  0x81   :  { %459 = vmatpush3.msra.mxu0 %v564_v3  ;;  %474 = vmatprep.mubr.msk.f32.mxu0 %vm538_vm0, %v535_v4 }
  0x82   :  { %460 = vmatprep.subr.mxu0 %v535_v4  ;;  %v106_v18 = vpop.permute.xlu0 %105  ;;  %v266_v21 = vpop.permute.xlu1 %265 }
  0x83   :  { %461 = vmatpush3.msra.mxu0 %v574_v5  ;;  %vm107_vm3 = vcmp.eq.s32.totalorder %v22_v15, %v106_v18  ;;  %vm267_vm5 = vcmp.eq.s32.totalorder %v22_v15, %v266_v21 }
  0x84   :  { %v378_v19 = vsel %vm107_vm3, 1.0, %v535_v4  ;;  %462 = vmatprep.subr.mxu0 %v535_v4  ;;  %v382_v23 = vsel %vm267_vm5, 1.0, %v535_v4 }
  0x85   :  { %463 = vmatpush3.msra.mxu0 %v580_v8  ;;  %456 = vmatmul.mubr.msk.f32.vlgmr.msra.gmra.mxu1 %vm29_vm1, %v378_v19 }
  0x86   :  { %464 = vmatprep.subr.mxu0 %v535_v4  ;;  %478 = vmatpush3.msra.mxu1 %v564_v3 }
  0x87   :  { %465 = vmatpush3.msra.mxu0 %v588_v9  ;;  %479 = vmatprep.subr.mxu1 %v535_v4 }
  0x88   :  { %466 = vmatprep.subr.mxu0 %v535_v4  ;;  %480 = vmatpush3.msra.mxu1 %v574_v5 }
  0x89   :  { %467 = vmatpush3.msra.mxu0 %v597_v10  ;;  %481 = vmatprep.subr.mxu1 %v535_v4 }
  0x8a   :  { %468 = vmatprep.subr.mxu0 %v535_v4  ;;  %482 = vmatpush3.msra.mxu1 %v580_v8 }
  0x8b   :  { %469 = vmatpush3.msra.mxu0 %v606_v11  ;;  %483 = vmatprep.subr.mxu1 %v535_v4 }
  0x8c   :  { %470 = vmatprep.subr.mxu0 %v535_v4  ;;  %484 = vmatpush3.msra.mxu1 %v588_v9 }
  0x8d   :  { %471 = vmatpush3.msra.mxu0 %v615_v12  ;;  %485 = vmatprep.subr.mxu1 %v535_v4 }
  0x8e   :  { %472 = vmatprep.subr.mxu0 %v535_v4  ;;  %486 = vmatpush3.msra.mxu1 %v597_v10 }
  0x8f   :  { %473 = vmatpush3.msra.mxu0 %v13_v13  ;;  %487 = vmatprep.subr.mxu1 %v535_v4 }
  0x90   :  { %475 = vmatmul.mubr.msk.f32.vlgmr.msra.gmra.mxu0 %vm29_vm1, %v380_v22  ;;  %488 = vmatpush3.msra.mxu1 %v606_v11 }
  0x91   :  { %489 = vmatprep.subr.mxu1 %v535_v4  ;;  %493 = vmatprep.mubr.msk.f32.mxu1 %vm538_vm0, %v535_v4 }
  0x92   :  { %490 = vmatpush3.msra.mxu1 %v615_v12 }
  0x93   :  { %491 = vmatprep.subr.mxu1 %v535_v4 }
  0x94   :  { %492 = vmatpush3.msra.mxu1 %v13_v13 }
  0x95   :  { %494 = vmatmul.mubr.msk.f32.vlgmr.msra.gmra.mxu1 %vm29_vm1, %v382_v23 }
 0x140   :  { %v99_v24 = vpop.f32.mrf.mxu0 }
 0x141   :  { %v103_v36 = vmul.f32 5.656854, %v99_v24 }
 0x142   :  { %v438_v25 = vpop.f32.mrf.mxu0 }
 0x145   :  { %v179_v26 = vpop.f32.mrf.mxu1 }
 0x146   :  { %v183_v27 = vmul.f32 5.656854, %v179_v26 }
 0x147   :  { %v457_v28 = vpop.f32.mrf.mxu1 }
 0x148   :  { %345 = vrot.lane.b32.xlu1 %v183_v27, %s539_s1 }
 0x150   :  { %v259_v29 = vpop.f32.mrf.mxu0 }
 0x151   :  { %v263_v30 = vmul.f32 5.656854, %v259_v29 }
 0x152   :  { %v476_v31 = vpop.f32.mrf.mxu0 }
 0x153   :  { %349 = vrot.lane.b32.xlu0 %v263_v30, %s540_s26 }
 0x155   :  { %v339_v32 = vpop.f32.mrf.mxu1 }
 0x156   :  { %v343_v33 = vmul.f32 5.656854, %v339_v32 }
 0x157   :  { %v495_v34 = vpop.f32.mrf.mxu1 }
 0x158   :  { %353 = vrot.lane.b32.xlu1 %v343_v33, %s541_s27 }
 0x1ba   :  { %v346_v35 = vpop.permute.xlu1 %345 }
 0x1bb   :  { %v357_v38 = vsel %vm356_vm6, %v103_v36, %v346_v35 }
 0x1c5   :  { %v350_v37 = vpop.permute.xlu0 %349 }
 0x1c6   :  { %v358_v39 = vsel %vm29_vm1, %v357_v38, %v350_v37 }
 0x1ca   :  { %v354_v40 = vpop.permute.xlu1 %353 }
 0x1cb   :  { %v360_v41 = vsel %vm359_vm7, %v358_v39, %v354_v40 }
 0x1cc   :  { %361 = vst [vmem:[#allocation2] sm:$0xff] %v360_v41 }
 0x1cd   :  { %522 = shalt.err (!%p519_p4)
}
 0x1ce   :  { %371 = dma.vmem_to_hbm [thread:$0]  %s369_s29, 128, %s681_s2, [#allocation3]  }
 0x1cf   :  { %531 = dma.done.wait [#allocation3], 128  }
 0x1d0   :  { %532 = vsyncadd [#allocation3], 4294967168 }
 0x1d1   :  { %375 = vsyncpa [#allocation3], 1 }

</bundles_post_ra>
